<compile_context>
chip_gen: v7x
topology: tpu7x:2x2x1
jax: 0.10.0
libtpu: 0.0.40
codegen_flags: <defaults>
</compile_context>

<pallas_src>
import functools

import jax
import jax.numpy as jnp
from jax import lax
from jax.experimental import pallas as pl
from jax.experimental.pallas import tpu as pltpu

_NT = (((1,), (1,)), ((), ()))   # contract last dims: [m,k] x [n,k] -> [m,n]
_INV_SQRT2 = 0.7071067811865476


def _round_up(x, m):
    return (x + m - 1) // m * m


def _head_kernel(x_ref, w1_ref, b1_ref, g_ref, be_ref, w2_ref, b2_ref,
                 o_ref, hn_ref, *, eps):
    # Inner grid axis (j) tiles the decoder / vocab dimension.  The
    # dense -> GELU -> LayerNorm stage only depends on the row tile (i), so it
    # is computed once per row tile and kept resident (in the compute dtype)
    # in VMEM scratch across the vocab axis.
    @pl.when(pl.program_id(1) == 0)
    def _():
        # x @ W1^T with f32 accumulation (W1 kept in PyTorch (out, in) layout).
        h = lax.dot_general(x_ref[...], w1_ref[...], _NT,
                            preferred_element_type=jnp.float32)
        h = h + b1_ref[...]
        # exact (erf) GELU -- matches torch.nn.functional.gelu default
        h = 0.5 * h * (1.0 + lax.erf(h * jnp.float32(_INV_SQRT2)))
        # LayerNorm: two-pass f32 statistics; gamma/beta applied here so the
        # decoder weight needs no wrapper-side fold.
        mu = jnp.mean(h, axis=-1, keepdims=True)
        d = h - mu
        var = jnp.mean(d * d, axis=-1, keepdims=True)
        hn = d * lax.rsqrt(var + jnp.float32(eps)) * g_ref[...] + be_ref[...]
        hn_ref[...] = hn.astype(hn_ref.dtype)

    # Decoder tile: hn @ W2^T + b2 (W2 streamed in its native (V, H) layout).
    out = lax.dot_general(hn_ref[...], w2_ref[...], _NT,
                          preferred_element_type=jnp.float32)
    o_ref[...] = (out + b2_ref[...]).astype(o_ref.dtype)


def _vmem_limit_bytes():
    cap = None
    try:
        cap = getattr(pltpu.get_tpu_info(), "vmem_capacity_bytes", None)
    except Exception:
        cap = None
    if not cap:
        cap = 64 * 1024 * 1024          # conservative default (v7x-sized VMEM)
    limit = int(cap * 3 // 4)           # ~48 MiB on v7x, ~96 MiB on v5e/v6e
    return max(32 * 1024 * 1024, min(limit, 100 * 1024 * 1024))


def _has_two_tensorcores():
    # Megacore chips (2 TensorCores behind one JAX device): v4, v5p, v7x.
    try:
        kind = jax.devices()[0].device_kind.lower()
    except Exception:
        return False
    return any(t in kind for t in ("v4", "v5p", "v7", "7x"))


def _vmem_estimate(tm, tn, H, c_bytes, o_bytes):
    # Double-buffered pipelined operands + single-buffered hn scratch.
    return (2 * tm * H * c_bytes          # x row tile
            + 2 * H * H * c_bytes         # W1 (grid-invariant, still 2 bufs)
            + 2 * tn * H * c_bytes        # W2 vocab tile (the dominant stream)
            + 2 * tm * tn * o_bytes       # output tile
            + tm * H * c_bytes            # hn scratch
            + 2 * (3 * H + tn) * 4)       # b1 / gamma / beta / b2


def stru_lm_head(features, dense_w, dense_b, ln_gamma, ln_beta, dec_w, dec_b,
                 *, eps=1e-12, tm=512, tn=2048, use_bf16=True,
                 out_dtype=None, two_tc=None):
    """StruLMHead forward: decoder(LayerNorm(gelu(dense(features)))) + bias.

    features : [..., H]
    dense_w  : [H, H]   (PyTorch Linear layout: (out, in))
    dense_b  : [H]
    ln_gamma, ln_beta : [H]
    dec_w    : [V, H]   (PyTorch Linear layout: (out, in))
    dec_b    : [V]
    Returns  : [..., V]
    """
    orig_shape = features.shape
    H = orig_shape[-1]
    V = dec_w.shape[0]
    x2d = features.reshape(-1, H)
    M = x2d.shape[0]
    out_dtype = features.dtype if out_dtype is None else out_dtype

    compute_dtype = jnp.bfloat16 if use_bf16 else features.dtype
    c_bytes = jnp.dtype(compute_dtype).itemsize
    o_bytes = jnp.dtype(out_dtype).itemsize
    sub = 16 if compute_dtype == jnp.bfloat16 else 8

    # Only dtype casts here (no-ops if the caller already stores/caches the
    # weights in the compute dtype): no transpose, no gamma/beta fold, so there
    # is no per-call O(V*H) weight re-materialization in HBM.
    x2d = x2d.astype(compute_dtype)
    w1 = dense_w.astype(compute_dtype)              # (H, H), (out, in)
    w2 = dec_w.astype(compute_dtype)                # (V, H), (out, in)
    b1 = dense_b.reshape(1, H).astype(jnp.float32)
    g = ln_gamma.reshape(1, H).astype(jnp.float32)
    be = ln_beta.reshape(1, H).astype(jnp.float32)
    b2 = dec_b.reshape(1, V).astype(jnp.float32)

    # ---- tile sizes ---------------------------------------------------------
    tm_eff = min(_round_up(tm, sub), _round_up(M, sub))
    if two_tc is None:
        two_tc = _has_two_tensorcores()
    # Only split the row dimension when there are 2 TensorCores to feed and a
    # single row tile would leave one idle; never on single-TC v5e/v6e, where a
    # split only doubles the W2 restream and per-step overhead.
    if two_tc and _round_up(M, tm_eff) // tm_eff < 2:
        half = _round_up((tm_eff + 1) // 2, sub)
        if half < tm_eff:
            tm_eff = half
    tn_eff = min(_round_up(tn, 128), _round_up(V, 128))

    # Shrink tiles if the pipelined working set would overflow the
    # per-generation VMEM budget (v7x: 64 MiB/TC; v5e/v6e: 128 MiB).
    vmem_limit = _vmem_limit_bytes()
    while (_vmem_estimate(tm_eff, tn_eff, H, c_bytes, o_bytes) > vmem_limit
           and tn_eff > 256):
        tn_eff = max(128, _round_up(tn_eff // 2, 128))
    while (_vmem_estimate(tm_eff, tn_eff, H, c_bytes, o_bytes) > vmem_limit
           and tm_eff > 2 * sub):
        tm_eff = max(sub, _round_up(tm_eff // 2, sub))
    # TODO(synk): at very large H the grid-invariant W1 double buffer dominates
    # VMEM; pipeline_mode=pl.Buffered(1) on the W1/b1/gamma/beta specs (and a
    # Buffered(3) sweep on the streamed W2/b2) would reclaim that headroom.

    # ---- padding (ragged M / V handled by zero-pad + slice) -----------------
    M_pad = _round_up(M, tm_eff)
    V_pad = _round_up(V, tn_eff)
    if M_pad != M:
        x2d = jnp.pad(x2d, ((0, M_pad - M), (0, 0)))
    if V_pad != V:
        w2 = jnp.pad(w2, ((0, V_pad - V), (0, 0)))
        b2 = jnp.pad(b2, ((0, 0), (0, V_pad - V)))

    grid = (M_pad // tm_eff, V_pad // tn_eff)

    out = pl.pallas_call(
        functools.partial(_head_kernel, eps=eps),
        out_shape=jax.ShapeDtypeStruct((M_pad, V_pad), out_dtype),
        grid_spec=pltpu.PrefetchScalarGridSpec(
            num_scalar_prefetch=0,
            grid=grid,
            in_specs=[
                pl.BlockSpec((tm_eff, H), lambda i, j: (i, 0)),    # x row tile
                pl.BlockSpec((H, H), lambda i, j: (0, 0)),         # W1 (out,in)
                pl.BlockSpec((1, H), lambda i, j: (0, 0)),         # b1
                pl.BlockSpec((1, H), lambda i, j: (0, 0)),         # gamma
                pl.BlockSpec((1, H), lambda i, j: (0, 0)),         # beta
                pl.BlockSpec((tn_eff, H), lambda i, j: (j, 0)),    # W2 (out,in)
                pl.BlockSpec((1, tn_eff), lambda i, j: (0, j)),    # b2
            ],
            out_specs=pl.BlockSpec((tm_eff, tn_eff), lambda i, j: (i, j)),
            scratch_shapes=[pltpu.VMEM((tm_eff, H), compute_dtype)],  # hn
        ),
        compiler_params=pltpu.CompilerParams(
            # Row tiles are independent; the vocab axis carries the hn scratch.
            dimension_semantics=("parallel", "arbitrary"),
            vmem_limit_bytes=vmem_limit,
        ),
    )(x2d, w1, b1, g, be, w2, b2)

    out = out[:M, :V]
    return out.reshape(orig_shape[:-1] + (V,))


def _reference(features, dense_w, dense_b, ln_gamma, ln_beta, dec_w, dec_b,
               eps=1e-12):
    h = features @ dense_w.T + dense_b
    h = 0.5 * h * (1.0 + lax.erf(h * jnp.float32(_INV_SQRT2)))
    mu = jnp.mean(h, axis=-1, keepdims=True)
    var = jnp.mean((h - mu) ** 2, axis=-1, keepdims=True)
    hn = (h - mu) * lax.rsqrt(var + eps) * ln_gamma + ln_beta
    return hn @ dec_w.T + dec_b


if __name__ == "__main__":
    # Small config consistent with the module: hidden_size=128, num_stru=256,
    # batch=2, seq=8 (hidden kept at 128 to satisfy TPU lane tiling).
    B, S, H, V = 2, 8, 128, 256
    eps = 1e-12

    key = jax.random.PRNGKey(0)
    k_x, k_w1, k_b1, k_w2, k_g, k_be = jax.random.split(key, 6)

    features = jax.random.normal(k_x, (B, S, H), dtype=jnp.float32)

    # PyTorch parameter layouts: dense.weight (H,H), dense.bias (H,),
    # decoder.weight (V,H), bias (V,) zeros, LN gamma/beta (H,).
    dense_w = jax.random.normal(k_w1, (H, H), dtype=jnp.float32) * 0.02
    dense_b = jax.random.normal(k_b1, (H,), dtype=jnp.float32) * 0.02
    dec_w = jax.random.normal(k_w2, (V, H), dtype=jnp.float32) * 0.02
    dec_b = jnp.zeros((V,), dtype=jnp.float32)
    ln_gamma = 1.0 + 0.1 * jax.random.normal(k_g, (H,), dtype=jnp.float32)
    ln_beta = 0.1 * jax.random.normal(k_be, (H,), dtype=jnp.float32)

    ref = _reference(features, dense_w, dense_b, ln_gamma, ln_beta,
                     dec_w, dec_b, eps=eps)

    # f32 path: tight tolerance against the pure-JAX reference.
    out_f32 = jax.block_until_ready(
        stru_lm_head(features, dense_w, dense_b, ln_gamma, ln_beta,
                     dec_w, dec_b, eps=eps, use_bf16=False))
    assert out_f32.shape == (B, S, V)
    err32 = float(jnp.max(jnp.abs(out_f32 - ref)))
    assert jnp.allclose(out_f32, ref, atol=1e-4, rtol=1e-4), err32

    # Default (bf16 compute / f32-accumulate) perf path: looser tolerance.
    out_bf16 = jax.block_until_ready(
        stru_lm_head(features, dense_w, dense_b, ln_gamma, ln_beta,
                     dec_w, dec_b, eps=eps))
    assert out_bf16.shape == (B, S, V)
    err16 = float(jnp.max(jnp.abs(out_bf16 - ref)))
    assert jnp.allclose(out_bf16, ref, atol=3e-2, rtol=3e-2), err16

    print("KERNEL_OK")
</pallas_src>

<mosaic_0001>
module attributes {stable_mosaic.version = 11 : i64} {
  func.func @_head_kernel(%arg0: i32, %arg1: i32, %arg2: memref<16x128xf32, #tpu.memory_space<vmem>>, %arg3: memref<128x128xf32, #tpu.memory_space<vmem>>, %arg4: memref<1x128xf32, #tpu.memory_space<vmem>>, %arg5: memref<1x128xf32, #tpu.memory_space<vmem>>, %arg6: memref<1x128xf32, #tpu.memory_space<vmem>>, %arg7: memref<256x128xf32, #tpu.memory_space<vmem>>, %arg8: memref<1x256xf32, #tpu.memory_space<vmem>>, %arg9: memref<16x256xf32, #tpu.memory_space<vmem>>, %arg10: memref<16x128xf32, #tpu.memory_space<vmem>>) attributes {dimension_semantics = [#tpu.dimension_semantics<parallel>, #tpu.dimension_semantics<arbitrary>], iteration_bounds = array<i64: 1, 1>, scalar_prefetch = 0 : i64, scratch_operands = 1 : i64, tpu.core_type = #tpu.core_type<tc>, window_params = [{transform_indices = @transform_0, window_bounds = array<i64: 16, 128>}, {pipeline_mode = #tpu.pipeline_mode<synchronous>, transform_indices = @transform_1, window_bounds = array<i64: 128, 128>}, {pipeline_mode = #tpu.pipeline_mode<synchronous>, transform_indices = @transform_2, window_bounds = array<i64: 1, 128>}, {pipeline_mode = #tpu.pipeline_mode<synchronous>, transform_indices = @transform_3, window_bounds = array<i64: 1, 128>}, {pipeline_mode = #tpu.pipeline_mode<synchronous>, transform_indices = @transform_4, window_bounds = array<i64: 1, 128>}, {transform_indices = @transform_5, window_bounds = array<i64: 256, 128>}, {transform_indices = @transform_6, window_bounds = array<i64: 1, 256>}, {transform_indices = @transform_7, window_bounds = array<i64: 16, 256>}]} {
    %c0_i32 = arith.constant 0 : i32
    %0 = arith.cmpi eq, %arg1, %c0_i32 : i32
    %1 = arith.extui %0 : i1 to i32
    %c0_i32_0 = arith.constant 0 : i32
    %2 = arith.cmpi ne, %1, %c0_i32_0 : i32
    scf.if %2 {
      %c0_8 = arith.constant 0 : index
      %c0_9 = arith.constant 0 : index
      %10 = vector.load %arg2[%c0_8, %c0_9] : memref<16x128xf32, #tpu.memory_space<vmem>>, vector<16x128xf32>
      %c0_10 = arith.constant 0 : index
      %c0_11 = arith.constant 0 : index
      %11 = vector.load %arg3[%c0_10, %c0_11] : memref<128x128xf32, #tpu.memory_space<vmem>>, vector<128x128xf32>
      %cst_12 = arith.constant dense<0.000000e+00> : vector<16x128xf32>
      %12 = tpu.matmul %10, %11, %cst_12 {dimension_numbers = #tpu.dot_dimension_numbers<[1], [1], [0], [0], [0, 0, 1, 0], [], []>} : vector<16x128xf32>, vector<128x128xf32>, vector<16x128xf32> -> vector<16x128xf32>
      %c0_13 = arith.constant 0 : index
      %c0_14 = arith.constant 0 : index
      %13 = vector.load %arg4[%c0_13, %c0_14] : memref<1x128xf32, #tpu.memory_space<vmem>>, vector<1x128xf32>
      %14 = vector.broadcast %13 : vector<1x128xf32> to vector<16x128xf32>
      %15 = arith.addf %12, %14 : vector<16x128xf32>
      %cst_15 = arith.constant 5.000000e-01 : f32
      %16 = vector.broadcast %cst_15 : f32 to vector<16x128xf32>
      %17 = arith.mulf %16, %15 : vector<16x128xf32>
      %cst_16 = arith.constant 0.707106769 : f32
      %18 = vector.broadcast %cst_16 : f32 to vector<16x128xf32>
      %19 = arith.mulf %15, %18 : vector<16x128xf32>
      %20 = math.erf %19 : vector<16x128xf32>
      %cst_17 = arith.constant 1.000000e+00 : f32
      %21 = vector.broadcast %cst_17 : f32 to vector<16x128xf32>
      %22 = arith.addf %21, %20 : vector<16x128xf32>
      %23 = arith.mulf %17, %22 : vector<16x128xf32>
      %cst_18 = arith.constant dense<0.000000e+00> : vector<16xf32>
      %24 = vector.multi_reduction <add>, %23, %cst_18 [1] : vector<16x128xf32> to vector<16xf32>
      %25 = vector.shape_cast %24 : vector<16xf32> to vector<16x1xf32>
      %cst_19 = arith.constant 1.280000e+02 : f32
      %26 = vector.broadcast %cst_19 : f32 to vector<16x1xf32>
      %27 = arith.divf %25, %26 : vector<16x1xf32>
      %28 = vector.broadcast %27 : vector<16x1xf32> to vector<16x128xf32>
      %29 = arith.subf %23, %28 : vector<16x128xf32>
      %30 = arith.mulf %29, %29 : vector<16x128xf32>
      %cst_20 = arith.constant dense<0.000000e+00> : vector<16xf32>
      %31 = vector.multi_reduction <add>, %30, %cst_20 [1] : vector<16x128xf32> to vector<16xf32>
      %32 = vector.shape_cast %31 : vector<16xf32> to vector<16x1xf32>
      %cst_21 = arith.constant 1.280000e+02 : f32
      %33 = vector.broadcast %cst_21 : f32 to vector<16x1xf32>
      %34 = arith.divf %32, %33 : vector<16x1xf32>
      %cst_22 = arith.constant 9.99999996E-13 : f32
      %35 = vector.broadcast %cst_22 : f32 to vector<16x1xf32>
      %36 = arith.addf %34, %35 : vector<16x1xf32>
      %37 = math.rsqrt %36 : vector<16x1xf32>
      %38 = vector.broadcast %37 : vector<16x1xf32> to vector<16x128xf32>
      %39 = arith.mulf %29, %38 : vector<16x128xf32>
      %c0_23 = arith.constant 0 : index
      %c0_24 = arith.constant 0 : index
      %40 = vector.load %arg5[%c0_23, %c0_24] : memref<1x128xf32, #tpu.memory_space<vmem>>, vector<1x128xf32>
      %41 = vector.broadcast %40 : vector<1x128xf32> to vector<16x128xf32>
      %42 = arith.mulf %39, %41 : vector<16x128xf32>
      %c0_25 = arith.constant 0 : index
      %c0_26 = arith.constant 0 : index
      %43 = vector.load %arg6[%c0_25, %c0_26] : memref<1x128xf32, #tpu.memory_space<vmem>>, vector<1x128xf32>
      %44 = vector.broadcast %43 : vector<1x128xf32> to vector<16x128xf32>
      %45 = arith.addf %42, %44 : vector<16x128xf32>
      %c0_27 = arith.constant 0 : index
      %c0_28 = arith.constant 0 : index
      %46 = vector.load %arg10[%c0_27, %c0_28] : memref<16x128xf32, #tpu.memory_space<vmem>>, vector<16x128xf32>
      tpu.vector_store %arg10[%c0_27, %c0_28], %45 {strides = array<i32>} : memref<16x128xf32, #tpu.memory_space<vmem>>, vector<16x128xf32>,
    } else {
    }
    %c0 = arith.constant 0 : index
    %c0_1 = arith.constant 0 : index
    %3 = vector.load %arg10[%c0, %c0_1] : memref<16x128xf32, #tpu.memory_space<vmem>>, vector<16x128xf32>
    %c0_2 = arith.constant 0 : index
    %c0_3 = arith.constant 0 : index
    %4 = vector.load %arg7[%c0_2, %c0_3] : memref<256x128xf32, #tpu.memory_space<vmem>>, vector<256x128xf32>
    %cst = arith.constant dense<0.000000e+00> : vector<16x256xf32>
    %5 = tpu.matmul %3, %4, %cst {dimension_numbers = #tpu.dot_dimension_numbers<[1], [1], [0], [0], [0, 0, 1, 0], [], []>} : vector<16x128xf32>, vector<256x128xf32>, vector<16x256xf32> -> vector<16x256xf32>
    %c0_4 = arith.constant 0 : index
    %c0_5 = arith.constant 0 : index
    %6 = vector.load %arg8[%c0_4, %c0_5] : memref<1x256xf32, #tpu.memory_space<vmem>>, vector<1x256xf32>
    %7 = vector.broadcast %6 : vector<1x256xf32> to vector<16x256xf32>
    %8 = arith.addf %5, %7 : vector<16x256xf32>
    %c0_6 = arith.constant 0 : index
    %c0_7 = arith.constant 0 : index
    %9 = vector.load %arg9[%c0_6, %c0_7] : memref<16x256xf32, #tpu.memory_space<vmem>>, vector<16x256xf32>
    tpu.vector_store %arg9[%c0_6, %c0_7], %8 {strides = array<i32>} : memref<16x256xf32, #tpu.memory_space<vmem>>, vector<16x256xf32>,
    return
  }
  func.func @transform_0(%arg0: i32, %arg1: i32) -> (i32, i32) {
    %c0_i32 = arith.constant 0 : i32
    %c0_i32_0 = arith.constant 0 : i32
    return %arg0, %c0_i32 : i32, i32
  }
  func.func @transform_1(%arg0: i32, %arg1: i32) -> (i32, i32) {
    %c0_i32 = arith.constant 0 : i32
    %c0_i32_0 = arith.constant 0 : i32
    %c0_i32_1 = arith.constant 0 : i32
    return %c0_i32, %c0_i32_0 : i32, i32
  }
  func.func @transform_2(%arg0: i32, %arg1: i32) -> (i32, i32) {
    %c0_i32 = arith.constant 0 : i32
    %c0_i32_0 = arith.constant 0 : i32
    %c0_i32_1 = arith.constant 0 : i32
    return %c0_i32, %c0_i32_0 : i32, i32
  }
  func.func @transform_3(%arg0: i32, %arg1: i32) -> (i32, i32) {
    %c0_i32 = arith.constant 0 : i32
    %c0_i32_0 = arith.constant 0 : i32
    %c0_i32_1 = arith.constant 0 : i32
    return %c0_i32, %c0_i32_0 : i32, i32
  }
  func.func @transform_4(%arg0: i32, %arg1: i32) -> (i32, i32) {
    %c0_i32 = arith.constant 0 : i32
    %c0_i32_0 = arith.constant 0 : i32
    %c0_i32_1 = arith.constant 0 : i32
    return %c0_i32, %c0_i32_0 : i32, i32
  }
  func.func @transform_5(%arg0: i32, %arg1: i32) -> (i32, i32) {
    %c0_i32 = arith.constant 0 : i32
    %c0_i32_0 = arith.constant 0 : i32
    return %arg1, %c0_i32 : i32, i32
  }
  func.func @transform_6(%arg0: i32, %arg1: i32) -> (i32, i32) {
    %c0_i32 = arith.constant 0 : i32
    %c0_i32_0 = arith.constant 0 : i32
    return %c0_i32, %arg1 : i32, i32
  }
  func.func @transform_7(%arg0: i32, %arg1: i32) -> (i32, i32) {
    %c0_i32 = arith.constant 0 : i32
    return %arg0, %arg1 : i32, i32
  }
}

</mosaic_0001>

<bundles_post_ra>
// kernel: tpu_custom_call.1
= control target key start
LH: loop header
LB: loop body
LE: loop exit
PB: predicated region body
PF: predicated region fallthrough
CT: control target
= control target key end

     0   :  { %12 = vsyncpa [#allocation4], 0  ;;  %s760_s0 = inlined_call_operand.hbm [shape: f32[16,128], index: 0, kind: input, shape index: {}]   ;;  %s761_s1 = inlined_call_operand.hbm [shape: f32[128,128], index: 1, kind: input, shape index: {}]   ;;  %s762_s2 = inlined_call_operand.vmem [shape: f32[1,128], index: 2, kind: input, shape index: {}]   ;;  %s763_s3 = inlined_call_operand.vmem [shape: f32[1,128], index: 3, kind: input, shape index: {}]   ;;  %s764_s4 = inlined_call_operand.vmem [shape: f32[1,128], index: 4, kind: input, shape index: {}]   ;;  %s765_s5 = inlined_call_operand.hbm [shape: f32[256,128], index: 5, kind: input, shape index: {}]   ;;  %s766_s6 = inlined_call_operand.vmem [shape: f32[1,256], index: 6, kind: input, shape index: {}]   ;;  %s767_s7 = inlined_call_operand.hbm [shape: f32[16,256], index: 7, kind: output, shape index: {}]  }
   0x1   :  { %13 = vsyncpa [#allocation7], 0 }
   0x2   :  { %14 = vsyncpa [#allocation5], 0  ;;  %s636_s24 = smov [#allocation6]   ;;  %s637_s26 = smov [#allocation3]  }
   0x3   :  { %s32_s25 = sshll.u32 %s636_s24, 4  ;;  %s20_s27 = sshll.u32 %s637_s26, 4  ;;  %s33_s25 = int_to_ptr.vmem [resolvable:$true] %s32_s25  ;;  %s684_s27 = int_to_ptr.vmem [resolvable:$true] %s20_s27 }
   0x4   :  { %s542_s30 = scalar_lea.hbm %s761_s1, 2048 }
   0x5   :  { %p543_p0 = scmp.ne.s32.totalorder %s761_s1, %s542_s30  ;;  %p546_p1 = scmp.lt.u32.totalorder %s542_s30, %s761_s1 }
   0x7   :  { %p548_p2 = pnand %p546_p1, %p543_p0 }
   0x9   :  { %551 = shalt.err (!%p548_p2)
}
   0xa   :  { %s552_s12 = scalar_lea.vmem %s33_s25, 2048  ;;  %p557_p4 = scmp.lt.s32.totalorder %s33_s25, %s33_s25 }
   0xb   :  { %p553_p3 = scmp.ne.s32.totalorder %s33_s25, %s552_s12  ;;  %p558_p5 = scmp.lt.s32.totalorder %s552_s12, %s552_s12 }
   0xd   :  { %p559_p6 = por %p558_p5, %p557_p4 }
   0xf   :  { %p560_p7 = pnand %p559_p6, %p553_p3 }
  0x11   :  { %563 = shalt.err (!%p560_p7)
}
  0x12   :  { %s638_s13 = smov 128   ;;  %s639_s14 = smov 8  }
  0x13   :  { %38 = dma.hbm_to_vmem [thread:$0]  %s761_s1, 2048, %s33_s25, [#allocation7], %s638_s13, %s638_s13, %s639_s14  }
  0x14   :  { %s564_s19 = scalar_lea.hbm %s760_s0, 256 }
  0x15   :  { %p565_p8 = scmp.ne.s32.totalorder %s760_s0, %s564_s19  ;;  %p568_p9 = scmp.lt.u32.totalorder %s564_s19, %s760_s0 }
  0x17   :  { %p570_p10 = pnand %p568_p9, %p565_p8 }
  0x19   :  { %573 = shalt.err (!%p570_p10)
}
  0x1a   :  { %s574_s24 = scalar_lea.vmem %s684_s27, 256  ;;  %p579_p12 = scmp.lt.s32.totalorder %s684_s27, %s684_s27 }
  0x1b   :  { %p575_p11 = scmp.ne.s32.totalorder %s684_s27, %s574_s24  ;;  %p580_p13 = scmp.lt.s32.totalorder %s574_s24, %s574_s24 }
  0x1d   :  { %p581_p0 = por %p580_p13, %p579_p12 }
  0x1f   :  { %p582_p1 = pnand %p581_p0, %p575_p11 }
  0x21   :  { %585 = shalt.err (!%p582_p1)
}
  0x22   :  { %26 = dma.hbm_to_vmem [thread:$0]  %s760_s0, 256, %s684_s27, [#allocation4], %s638_s13, %s638_s13, %s639_s14  }
  0x23   :  { %s640_s26 = smov [#allocation8]   ;;  %s586_s8 = scalar_lea.hbm %s765_s5, 4096 }
  0x24   :  { %s50_s28 = sshll.u32 %s640_s26, 4  ;;  %p587_p2 = scmp.ne.s32.totalorder %s765_s5, %s586_s8  ;;  %s51_s28 = int_to_ptr.vmem [resolvable:$true] %s50_s28 }
  0x25   :  { %p590_p3 = scmp.lt.u32.totalorder %s586_s8, %s765_s5 }
  0x27   :  { %p592_p4 = pnand %p590_p3, %p587_p2 }
  0x29   :  { %595 = shalt.err (!%p592_p4)
}
  0x2a   :  { %s596_s15 = scalar_lea.vmem %s51_s28, 4096  ;;  %p601_p6 = scmp.lt.s32.totalorder %s51_s28, %s51_s28 }
  0x2b   :  { %p597_p5 = scmp.ne.s32.totalorder %s51_s28, %s596_s15  ;;  %p602_p7 = scmp.lt.s32.totalorder %s596_s15, %s596_s15 }
  0x2d   :  { %p603_p8 = por %p602_p7, %p601_p6 }
  0x2f   :  { %p604_p9 = pnand %p603_p8, %p597_p5 }
  0x31   :  { %607 = shalt.err (!%p604_p9)
}
  0x32   :  { %56 = dma.hbm_to_vmem [thread:$0]  %s765_s5, 4096, %s51_s28, [#allocation7], %s638_s13, %s638_s13, %s639_s14  }
  0x33   :  { %630 = dma.done.wait [#allocation4], 256  }
  0x34   :  { %631 = vsyncadd [#allocation4], 4294967040 }
  0x35   :  { %632 = dma.done.wait [#allocation7], 6144  }
  0x36   :  { %633 = vsyncadd [#allocation7], 4294961152  ;;  %v74_v0 = vld [vmem:[#allocation6] sm:$0xff]  ;;  %v75_v1 = vld [vmem:[#allocation6 + $0x8] sm:$0xff] }
  0x37   :  { %v76_v2 = vld [vmem:[#allocation6 + $0x10] sm:$0xff]  ;;  %v462_v3 = vpack.c.bf16 %v75_v1, %v74_v0  ;;  %v77_v4 = vld [vmem:[#allocation6 + $0x18] sm:$0xff]  ;;  %v78_v7 = vld [vmem:[#allocation6 + $0x20] sm:$0xff] }
  0x38   :  { %v466_v5 = vpack.c.bf16 %v77_v4, %v76_v2  ;;  %v72_v6 = vld [vmem:[#allocation3] sm:$0xff]  ;;  %v79_v8 = vld [vmem:[#allocation6 + $0x28] sm:$0xff]  ;;  %v81_v11 = vld [vmem:[#allocation6 + $0x38] sm:$0xff] }
  0x39   :  { %463 = vmatprep.subr.bf16.mxu0 %v462_v3  ;;  %459 = vmatprep.mubr.f32.mxu0 %v72_v6  ;;  %v470_v9 = vpack.c.bf16 %v79_v8, %v78_v7  ;;  %v80_v10 = vld [vmem:[#allocation6 + $0x30] sm:$0xff]  ;;  %v82_v13 = vld [vmem:[#allocation6 + $0x40] sm:$0xff]  ;;  %v83_v14 = vld [vmem:[#allocation6 + $0x48] sm:$0xff] }
  0x3a   :  { %465 = vmatpush3.bf16.xpose.msra.mxu0 %v462_v3  ;;  %v474_v12 = vpack.c.bf16 %v81_v11, %v80_v10  ;;  %v478_v15 = vpack.c.bf16 %v83_v14, %v82_v13  ;;  %v84_v16 = vld [vmem:[#allocation6 + $0x50] sm:$0xff]  ;;  %v85_v17 = vld [vmem:[#allocation6 + $0x58] sm:$0xff]  ;;  %v86_v19 = vld [vmem:[#allocation6 + $0x60] sm:$0xff] }
  0x3b   :  { %467 = vmatprep.subr.bf16.mxu0 %v466_v5  ;;  %v482_v18 = vpack.c.bf16 %v85_v17, %v84_v16  ;;  %v87_v20 = vld [vmem:[#allocation6 + $0x68] sm:$0xff]  ;;  %v88_v22 = vld [vmem:[#allocation6 + $0x70] sm:$0xff]  ;;  %v89_v23 = vld [vmem:[#allocation6 + $0x78] sm:$0xff] }
  0x3c   :  { %v486_v21 = vpack.c.bf16 %v87_v20, %v86_v19  ;;  %v490_v24 = vpack.c.bf16 %v89_v23, %v88_v22  ;;  %v73_v25 = vld [vmem:[#allocation3 + $0x8] sm:$0xff]  ;;  %v370_v26 = vld [vmem:[%s762_s2] ss:$0 sm:$0xff]  ;;  %v243_v41 = vld [vmem:[#allocation8 + $0x80] sm:$0xff] }
  0x3d   :  { %v244_v42 = vld [vmem:[#allocation8 + $0x88] sm:$0xff]  ;;  %v227_v43 = vld [vmem:[#allocation8] sm:$0xff]  ;;  %v245_v46 = vld [vmem:[#allocation8 + $0x90] sm:$0xff] }
  0x3e   :  { %v494_v44 = vpack.c.bf16 %v244_v42, %v243_v41  ;;  %v228_v45 = vld [vmem:[#allocation8 + $0x8] sm:$0xff]  ;;  %v246_v47 = vld [vmem:[#allocation8 + $0x98] sm:$0xff]  ;;  %v229_v50 = vld [vmem:[#allocation8 + $0x10] sm:$0xff] }
  0x3f   :  { %v496_v48 = vpack.c.bf16 %v228_v45, %v227_v43  ;;  %v498_v49 = vpack.c.bf16 %v246_v47, %v245_v46  ;;  %v230_v51 = vld [vmem:[#allocation8 + $0x18] sm:$0xff]  ;;  %v247_v52 = vld [vmem:[#allocation8 + $0xa0] sm:$0xff]  ;;  %v248_v53 = vld [vmem:[#allocation8 + $0xa8] sm:$0xff] }
  0x40   :  { %495 = vmatprep.subr.bf16.mxu1 %v494_v44  ;;  %v500_v54 = vpack.c.bf16 %v230_v51, %v229_v50  ;;  %v502_v55 = vpack.c.bf16 %v248_v53, %v247_v52  ;;  %v231_v56 = vld [vmem:[#allocation8 + $0x20] sm:$0xff]  ;;  %v232_v57 = vld [vmem:[#allocation8 + $0x28] sm:$0xff]  ;;  %v249_v58 = vld [vmem:[#allocation8 + $0xb0] sm:$0xff] }
  0x41   :  { %497 = vmatpush3.bf16.xpose.msra.mxu1 %v496_v48  ;;  %v250_v59 = vld [vmem:[#allocation8 + $0xb8] sm:$0xff]  ;;  %v504_v60 = vpack.c.bf16 %v232_v57, %v231_v56  ;;  %v233_v62 = vld [vmem:[#allocation8 + $0x30] sm:$0xff]  ;;  %v251_v0 = vld [vmem:[#allocation8 + $0xc0] sm:$0xff] }
  0x42   :  { %469 = vmatpush3.bf16.xpose.msra.mxu0 %v466_v5  ;;  %499 = vmatprep.subr.bf16.mxu1 %v498_v49  ;;  %v506_v61 = vpack.c.bf16 %v250_v59, %v249_v58  ;;  %v234_v63 = vld [vmem:[#allocation8 + $0x38] sm:$0xff]  ;;  %v252_v1 = vld [vmem:[#allocation8 + $0xc8] sm:$0xff]  ;;  %v235_v4 = vld [vmem:[#allocation8 + $0x40] sm:$0xff]  ;;  %v261_v49 = vlaneseq }
  0x43   :  { %471 = vmatprep.subr.bf16.mxu0 %v470_v9  ;;  %v508_v2 = vpack.c.bf16 %v234_v63, %v233_v62  ;;  %v510_v3 = vpack.c.bf16 %v252_v1, %v251_v0  ;;  %v236_v5 = vld [vmem:[#allocation8 + $0x48] sm:$0xff]  ;;  %v253_v6 = vld [vmem:[#allocation8 + $0xd0] sm:$0xff]  ;;  %v254_v7 = vld [vmem:[#allocation8 + $0xd8] sm:$0xff] }
  0x44   :  { %v512_v8 = vpack.c.bf16 %v236_v5, %v235_v4  ;;  %v237_v10 = vld [vmem:[#allocation8 + $0x50] sm:$0xff]  ;;  %v238_v11 = vld [vmem:[#allocation8 + $0x58] sm:$0xff]  ;;  %v256_v22 = vld [vmem:[#allocation8 + $0xe8] sm:$0xff]  ;;  %v262_v50 = vshrl.u32 %v261_v49, 7 }
  0x45   :  { %v372_v42 = vld [vmem:[%s764_s4] ss:$0 sm:$0xff]  ;;  %s641_s4 = smov [#allocation9]  }
  0x46   :  { %v263_v51 = vsub.s32 0, %v262_v50  ;;  %v259_v52 = vld [vmem:[%s766_s6] sm:$0x3]  ;;  %v267_v53 = vsub.s32 1, %v262_v50  ;;  %s357_s19 = sshll.u32 %s641_s4, 4  ;;  %s358_s19 = int_to_ptr.vmem [resolvable:$true] %s357_s19 }
  0x47   :  { %s608_s20 = scalar_lea.vmem %s358_s19, 512  ;;  %p613_p11 = scmp.lt.s32.totalorder %s358_s19, %s358_s19 }
  0x48   :  { %p609_p10 = scmp.ne.s32.totalorder %s358_s19, %s608_s20  ;;  %p614_p12 = scmp.lt.s32.totalorder %s608_s20, %s608_s20 }
  0x49   :  { %501 = vmatpush3.bf16.xpose.msra.mxu1 %v500_v54  ;;  %v264_v54 = vrot.slane %v259_v52, %v263_v51 }
  0x4a   :  { %473 = vmatpush3.bf16.xpose.msra.mxu0 %v470_v9  ;;  %503 = vmatprep.subr.bf16.mxu1 %v502_v55  ;;  %v514_v9 = vpack.c.bf16 %v254_v7, %v253_v6  ;;  %v268_v55 = vrot.slane %v259_v52, %v267_v53  ;;  %p615_p13 = por %p614_p12, %p613_p11 }
  0x4b   :  { %475 = vmatprep.subr.bf16.mxu0 %v474_v12 }
  0x4c   :  { %p616_p0 = pnand %p615_p13, %p609_p10 }
  0x51   :  { %505 = vmatpush3.bf16.xpose.msra.mxu1 %v504_v60 }
  0x52   :  { %477 = vmatpush3.bf16.xpose.msra.mxu0 %v474_v12  ;;  %507 = vmatprep.subr.bf16.mxu1 %v506_v61  ;;  %v516_v12 = vpack.c.bf16 %v238_v11, %v237_v10 }
  0x53   :  { %479 = vmatprep.subr.bf16.mxu0 %v478_v15 }
  0x59   :  { %509 = vmatpush3.bf16.xpose.msra.mxu1 %v508_v2 }
  0x5a   :  { %481 = vmatpush3.bf16.xpose.msra.mxu0 %v478_v15  ;;  %511 = vmatprep.subr.bf16.mxu1 %v510_v3 }
  0x5b   :  { %483 = vmatprep.subr.bf16.mxu0 %v482_v18 }
  0x61   :  { %513 = vmatpush3.bf16.xpose.msra.mxu1 %v512_v8 }
  0x62   :  { %485 = vmatpush3.bf16.xpose.msra.mxu0 %v482_v18  ;;  %515 = vmatprep.subr.bf16.mxu1 %v514_v9 }
  0x63   :  { %487 = vmatprep.subr.bf16.mxu0 %v486_v21 }
  0x69   :  { %517 = vmatpush3.bf16.xpose.msra.mxu1 %v516_v12 }
  0x6a   :  { %489 = vmatpush3.bf16.xpose.msra.mxu0 %v486_v21  ;;  %v255_v21 = vld [vmem:[#allocation8 + $0xe0] sm:$0xff] }
  0x6b   :  { %491 = vmatprep.subr.bf16.mxu0 %v490_v24  ;;  %v518_v23 = vpack.c.bf16 %v256_v22, %v255_v21 }
  0x6d   :  { %519 = vmatprep.subr.bf16.mxu1 %v518_v23 }
  0x72   :  { %493 = vmatpush3.bf16.xpose.msra.mxu0 %v490_v24  ;;  %v239_v24 = vld [vmem:[#allocation8 + $0x60] sm:$0xff] }
  0x79   :  { %460 = vmatmul.mubr.f32.vlgmr.msra.gmra.mrb[0].mxu0 %v73_v25  ;;  %v240_v25 = vld [vmem:[#allocation8 + $0x68] sm:$0xff] }
 0x14c   :  { %v461_v27 = vpop.f32.mrb[0].mxu0 }
 0x14d   :  { %v169_v28 = vadd.f32 %v461_v27, %v370_v26  ;;  %v163_v29 = vpop.f32.mrb[1].mxu0  ;;  %v257_v27 = vld [vmem:[#allocation8 + $0xf0] sm:$0xff] }
 0x14e   :  { %v164_v30 = vadd.f32 %v370_v26, %v163_v29  ;;  %v520_v26 = vpack.c.bf16 %v240_v25, %v239_v24  ;;  %v241_v29 = vld [vmem:[#allocation8 + $0x70] sm:$0xff] }
 0x14f   :  { %v175_v31 = vmul.f32 0.70710677, %v169_v28  ;;  %v173_v39 = vmul.f32 0.5, %v169_v28  ;;  %v258_v28 = vld [vmem:[#allocation8 + $0xf8] sm:$0xff] }
 0x150   :  { %v174_v32 = vmul.f32 0.70710677, %v164_v30  ;;  %v172_v35 = vmul.f32 0.5, %v164_v30  ;;  %521 = vmatpush3.bf16.xpose.msra.mxu1 %v520_v26  ;;  %v522_v30 = vpack.c.bf16 %v258_v28, %v257_v27 }
 0x151   :  { %534 = verf.f32 %v175_v31  ;;  %v242_v31 = vld [vmem:[#allocation8 + $0x78] sm:$0xff] }
 0x152   :  { %536 = verf.f32 %v174_v32  ;;  %523 = vmatprep.subr.bf16.mxu1 %v522_v30  ;;  %v524_v32 = vpack.c.bf16 %v242_v31, %v241_v29 }
 0x158   :  { %525 = vmatpush3.bf16.xpose.msra.mxu1 %v524_v32 }
 0x15b   :  { %v535_v33 = vpop.eup %534 }
 0x15c   :  { %v537_v34 = vpop.eup %536  ;;  %v179_v38 = vadd.f32 1.0, %v535_v33 }
 0x15d   :  { %v178_v36 = vadd.f32 1.0, %v537_v34 }
 0x15e   :  { %v181_v40 = vmul.f32 %v179_v38, %v173_v39 }
 0x15f   :  { %v180_v37 = vmul.f32 %v178_v36, %v172_v35 }
 0x161   :  { %182 = vadd.xlane.f32.xlu0 %v180_v37 }
 0x165   :  { %184 = vadd.xlane.f32.xlu0 %v181_v40 }
 0x1ee   :  { %v183_v13 = vpop.xlane.xlu0 %182 }
 0x1ef   :  { %v187_v14 = vmul.f32 0.0078125, %v183_v13 }
 0x1f1   :  { %v189_v15 = vsub.f32 %v180_v37, %v187_v14 }
 0x1f2   :  { %v185_v16 = vpop.xlane.xlu0 %184 }
 0x1f3   :  { %v188_v17 = vmul.f32 0.0078125, %v185_v16  ;;  %v191_v18 = vmul.f32 %v189_v15, %v189_v15 }
 0x1f5   :  { %v190_v19 = vsub.f32 %v181_v40, %v188_v17  ;;  %193 = vadd.xlane.f32.xlu1 %v191_v18  ;;  %v371_v40 = vld [vmem:[%s763_s3] ss:$0 sm:$0xff] }
 0x1f7   :  { %v192_v20 = vmul.f32 %v190_v19, %v190_v19 }
 0x1f9   :  { %195 = vadd.xlane.f32.xlu1 %v192_v20 }
 0x282   :  { %v194_v33 = vpop.xlane.xlu1 %193 }
 0x283   :  { %v197_v34 = vmul.f32 0.0078125, %v194_v33 }
 0x285   :  { %v199_v35 = vadd.f32 1e-12, %v197_v34 }
 0x286   :  { %v196_v36 = vpop.xlane.xlu1 %195 }
 0x287   :  { %538 = vrsqrt.f32 %v199_v35  ;;  %v198_v37 = vmul.f32 0.0078125, %v196_v36 }
 0x289   :  { %v200_v38 = vadd.f32 1e-12, %v198_v37 }
 0x28b   :  { %540 = vrsqrt.f32 %v200_v38 }
 0x291   :  { %v539_v39 = vpop.eup %538 }
 0x292   :  { %v203_v41 = vmul.f32 %v539_v39, %v189_v15 }
 0x294   :  { %v212_v43 = vmul.f32 %v371_v40, %v203_v41 }
 0x295   :  { %v541_v44 = vpop.eup %540 }
 0x296   :  { %v204_v45 = vmul.f32 %v541_v44, %v190_v19  ;;  %v221_v46 = vadd.f32 %v372_v42, %v212_v43 }
 0x298   :  { %v213_v47 = vmul.f32 %v371_v40, %v204_v45  ;;  %423 = vmatprep.mubr.f32.mxu1 %v221_v46 }
 0x299   :  { %424 = vmatmul.mubr.f32.vlgmr.msra.gmra.mrb[0].mxu1 %v221_v46 }
 0x29a   :  { %v222_v48 = vadd.f32 %v372_v42, %v213_v47 }
 0x29c   :  { %425 = vmatprep.mubr.f32.mxu1 %v222_v48 }
 0x29d   :  { %426 = vmatmul.mubr.f32.gmra.mrb[2].mxu1 %v222_v48 }
 0x36c   :  { %v337_v56 = vpop.f32.mrb[0].mxu1 }
 0x36d   :  { %v338_v57 = vadd.f32 %v337_v56, %v264_v54  ;;  %v339_v58 = vpop.f32.mrb[1].mxu1 }
 0x36e   :  { %v340_v59 = vadd.f32 %v339_v58, %v268_v55 }
 0x36f   :  { %348 = vst [vmem:[#allocation9] sm:$0xff] %v338_v57 }
 0x370   :  { %349 = vst [vmem:[#allocation9 + $0x8] sm:$0xff] %v340_v59  ;;  %v343_v60 = vpop.f32.mrb[2].mxu1 }
 0x371   :  { %v344_v61 = vadd.f32 %v343_v60, %v264_v54  ;;  %v345_v62 = vpop.f32.mrb[3].mxu1 }
 0x372   :  { %v346_v63 = vadd.f32 %v345_v62, %v268_v55 }
 0x373   :  { %350 = vst [vmem:[#allocation9 + $0x10] sm:$0xff] %v344_v61 }
 0x374   :  { %351 = vst [vmem:[#allocation9 + $0x18] sm:$0xff] %v346_v63 }
 0x375   :  { %619 = shalt.err (!%p616_p0)
}
 0x376   :  { %s620_s22 = scalar_lea.hbm %s767_s7, 512 }
 0x377   :  { %p621_p1 = scmp.ne.s32.totalorder %s767_s7, %s620_s22  ;;  %p624_p2 = scmp.lt.u32.totalorder %s620_s22, %s767_s7 }
 0x379   :  { %p626_p3 = pnand %p624_p2, %p621_p1 }
 0x37b   :  { %629 = shalt.err (!%p626_p3)
}
 0x37c   :  { %s642_s26 = smov 256   ;;  %s643_s28 = smov 16  }
 0x37d   :  { %363 = dma.vmem_to_hbm [thread:$0]  %s358_s19, 512, %s767_s7, [#allocation5], %s642_s26, %s642_s26, %s643_s28  }
 0x37e   :  { %634 = dma.done.wait [#allocation5], 512  }
 0x37f   :  { %635 = vsyncadd [#allocation5], 4294966784 }
 0x380   :  { %367 = vsyncpa [#allocation4], 1 }
 0x381   :  { %368 = vsyncpa [#allocation7], 1 }
 0x382   :  { %369 = vsyncpa [#allocation5], 1 }

</bundles_post_ra>
